<compile_context>
chip_gen: v6e
topology: v6e:2x2x1
jax: 0.10.0
libtpu: 0.0.40
codegen_flags: <defaults>
</compile_context>

<pallas_src>
import functools

import jax
import jax.numpy as jnp
from jax.experimental import pallas as pl
from jax.experimental.pallas import tpu as pltpu


def _round_up(x, m):
    return (x + m - 1) // m * m


# ----------------------------------------------------------------------------
# Fused kernel: fused output-linear -> var_linear -> masked softmax (deferred
# normalization) -> prob @ var_embedding.
# ----------------------------------------------------------------------------
def _sem_mlp_kernel(x_ref, wo_ref, bo_ref, wv_ref, bv_ref, emb_ref,
                    mean_ref, logvar_ref, *, nz_pad):
    x = x_ref[...]                                               # (bb, ni) bf16

    # Fused output projection: one MXU-width matmul covering both the mean and
    # logvar halves (lane-aligned split at nz_pad), f32 accumulation.
    mv = (jnp.dot(x, wo_ref[...], preferred_element_type=jnp.float32)
          + bo_ref[...])                                         # (bb, 2*nz_pad) f32
    mean_raw = mv[:, :nz_pad]                                    # (bb, nz_pad)
    logvar = mv[:, nz_pad:]                                      # (bb, nz_pad)

    # var_linear + masked softmax: padded logits columns carry a -1e30 bias so
    # exp() underflows to exactly 0 on them.  Softmax math stays f32.
    logits = (jnp.dot(mean_raw.astype(jnp.bfloat16), wv_ref[...],
                      preferred_element_type=jnp.float32)
              + bv_ref[...])                                     # (bb, nv_pad) f32
    m = jnp.max(logits, axis=-1, keepdims=True)
    e = jnp.exp(logits - m)                                      # pad cols -> 0
    rowsum = jnp.sum(e, axis=-1, keepdims=True)                  # (bb, 1) f32

    # Unnormalized prob @ var_embedding, then one EUP reciprocal to normalize
    # the small (bb, nz_pad) result instead of dividing the (bb, nv_pad) probs.
    unnorm = jnp.dot(e.astype(jnp.bfloat16), emb_ref[...],
                     preferred_element_type=jnp.float32)         # (bb, nz_pad)
    mean_ref[...] = unnorm * pl.reciprocal(rowsum, approx=True)
    logvar_ref[...] = logvar


# ----------------------------------------------------------------------------
# VMEM budget estimate for one grid step (x/outputs double-buffered, weights
# resident once).  Used to auto-shrink the batch tile and set vmem_limit_bytes.
# ----------------------------------------------------------------------------
def _vmem_bytes(bb, ni, nz_pad, nv_pad):
    bf16, f32 = 2, 4
    x_bytes = 2 * bb * ni * bf16                       # input, double-buffered
    w_bytes = (ni * 2 * nz_pad * bf16 + 2 * nz_pad * f32     # fused W/b output
               + nz_pad * nv_pad * bf16 + nv_pad * f32       # W/b var_linear
               + nv_pad * nz_pad * bf16)                     # var_embedding
    out_bytes = 2 * 2 * bb * nz_pad * f32              # two outputs, dbl-buffer
    return x_bytes + 2 * w_bytes + out_bytes           # 2x weights: headroom


# ----------------------------------------------------------------------------
# Wrapper: weight prep (transpose / fuse / 128-lane pad / bf16 cast) + batch
# padding + pallas_call.
# ----------------------------------------------------------------------------
def sem_mlp_encoder_forward(inputs, params, *, block_b=512):
    """SemMLPEncoder.forward with to_map=True, return_p=False.

    inputs: (bsz, ni) float32.  Returns (mean, logvar), each (bsz, nz) float32.
    """
    bsz, ni = inputs.shape
    two_nz = params["w_output"].shape[0]
    nz = two_nz // 2
    n_vars = params["w_var_linear"].shape[0]

    nz_pad = _round_up(nz, 128)
    nv_pad = _round_up(n_vars, 128)

    f32 = jnp.float32
    bf16 = jnp.bfloat16

    # ---- one-time weight prep (host/XLA side, outside the hot kernel) ------
    w_out_t = params["w_output"].astype(f32).T                   # (ni, 2*nz)
    w_out = jnp.zeros((ni, 2 * nz_pad), f32)
    w_out = w_out.at[:, :nz].set(w_out_t[:, :nz])                # mean half
    w_out = w_out.at[:, nz_pad:nz_pad + nz].set(w_out_t[:, nz:]) # logvar half
    w_out = w_out.astype(bf16)

    b_out = jnp.zeros((1, 2 * nz_pad), f32)
    b_out = b_out.at[0, :nz].set(params["b_output"][:nz].astype(f32))
    b_out = b_out.at[0, nz_pad:nz_pad + nz].set(params["b_output"][nz:].astype(f32))

    w_var = jnp.zeros((nz_pad, nv_pad), f32)
    w_var = w_var.at[:nz, :n_vars].set(params["w_var_linear"].astype(f32).T)
    w_var = w_var.astype(bf16)

    # Padded logits columns get -1e30 so softmax assigns them zero probability.
    b_var = jnp.full((1, nv_pad), -1e30, f32)
    b_var = b_var.at[0, :n_vars].set(params["b_var_linear"].astype(f32))

    emb = jnp.zeros((nv_pad, nz_pad), f32)
    emb = emb.at[:n_vars, :nz].set(params["var_embedding"].astype(f32))
    emb = emb.astype(bf16)

    # ---- batch tiling: big lane-dense tiles, v7x-safe VMEM budget ----------
    bb = max(8, min(_round_up(block_b, 8), _round_up(bsz, 8)))
    while bb > 8 and _vmem_bytes(bb, ni, nz_pad, nv_pad) > (28 << 20):
        bb = _round_up(bb // 2, 8)
    bsz_p = _round_up(bsz, bb)

    x_p = inputs.astype(bf16)
    if bsz_p != bsz:
        x_p = jnp.pad(x_p, ((0, bsz_p - bsz), (0, 0)))

    grid = (bsz_p // bb,)
    rep = lambda i: (0, 0)     # weights replicated across batch blocks

    vmem_limit = int(min(48 << 20, max(32 << 20, 1.5 * _vmem_bytes(bb, ni, nz_pad, nv_pad))))
    cost = pl.CostEstimate(
        flops=2 * bsz_p * (ni * 2 * nz_pad + nz_pad * nv_pad + nv_pad * nz_pad),
        transcendentals=bsz_p * (nv_pad + 1),
        bytes_accessed=(bsz_p * ni * 2 + 2 * bsz_p * nz_pad * 4
                        + ni * 2 * nz_pad * 2 + nz_pad * nv_pad * 2
                        + nv_pad * nz_pad * 2),
    )

    kernel = functools.partial(_sem_mlp_kernel, nz_pad=nz_pad)

    mean_p, logvar_p = pl.pallas_call(
        kernel,
        out_shape=(jax.ShapeDtypeStruct((bsz_p, nz_pad), f32),
                   jax.ShapeDtypeStruct((bsz_p, nz_pad), f32)),
        grid_spec=pl.GridSpec(
            grid=grid,
            in_specs=[
                pl.BlockSpec((bb, ni), lambda i: (i, 0)),        # x block
                pl.BlockSpec((ni, 2 * nz_pad), rep),             # W_out fused (bf16)
                pl.BlockSpec((1, 2 * nz_pad), rep),              # b_out fused (f32)
                pl.BlockSpec((nz_pad, nv_pad), rep),             # W_var^T (bf16)
                pl.BlockSpec((1, nv_pad), rep),                  # b_var (+ -1e30 pad)
                pl.BlockSpec((nv_pad, nz_pad), rep),             # var_embedding
            ],
            out_specs=[pl.BlockSpec((bb, nz_pad), lambda i: (i, 0)),
                       pl.BlockSpec((bb, nz_pad), lambda i: (i, 0))],
        ),
        compiler_params=pltpu.CompilerParams(
            dimension_semantics=("parallel",),
            vmem_limit_bytes=vmem_limit),
        cost_estimate=cost,
    )(x_p, w_out, b_out, w_var, b_var, emb)

    return mean_p[:bsz, :nz], logvar_p[:bsz, :nz]


# ----------------------------------------------------------------------------
# Pure-JAX reference (mirrors the PyTorch forward exactly, all f32).
# ----------------------------------------------------------------------------
def _ref_forward(inputs, params):
    two_nz = params["w_output"].shape[0]
    nz = two_nz // 2
    mv = inputs @ params["w_output"].T + params["b_output"]
    mean, logvar = mv[:, :nz], mv[:, nz:]
    logits = mean @ params["w_var_linear"].T + params["b_var_linear"]
    prob = jax.nn.softmax(logits, axis=-1)
    mean = prob @ params["var_embedding"]
    return mean, logvar


# ----------------------------------------------------------------------------
# Deterministic synthetic parameters + smoke test.
# ----------------------------------------------------------------------------
def init_params(key, ni, nz, n_vars):
    k = jax.random.split(key, 5)
    return {
        "w_output": 0.1 * jax.random.normal(k[0], (2 * nz, ni), jnp.float32),
        "b_output": 0.1 * jax.random.normal(k[1], (2 * nz,), jnp.float32),
        "w_var_linear": 0.1 * jax.random.normal(k[2], (n_vars, nz), jnp.float32),
        "b_var_linear": 0.1 * jax.random.normal(k[3], (n_vars,), jnp.float32),
        # simplex_init surrogate: each row is a point on the probability simplex
        "var_embedding": jax.nn.softmax(
            jax.random.normal(k[4], (n_vars, nz), jnp.float32), axis=-1),
    }


if __name__ == "__main__":
    bsz, ni, nz, n_vars = 4, 32, 16, 10

    key = jax.random.PRNGKey(0)
    k_param, k_x = jax.random.split(key)
    params = init_params(k_param, ni, nz, n_vars)
    x = jax.random.normal(k_x, (bsz, ni), jnp.float32)

    mean, logvar = sem_mlp_encoder_forward(x, params)
    mean, logvar = jax.block_until_ready((mean, logvar))

    mean_ref, logvar_ref = _ref_forward(x, params)
    assert mean.shape == (bsz, nz) and logvar.shape == (bsz, nz)
    # bf16 weights/inputs with f32 accumulation -> relaxed tolerance vs f32 ref.
    assert jnp.allclose(mean, mean_ref, atol=3e-2, rtol=3e-2)
    assert jnp.allclose(logvar, logvar_ref, atol=3e-2, rtol=3e-2)

    # TODO(synk): sample/encode/reparameterize/calc_mi/srec_loss helpers are
    # host-side utilities (RNG + reductions), intentionally not kernelized.
    print("KERNEL_OK")
</pallas_src>

<mosaic_0001>
module attributes {stable_mosaic.version = 11 : i64} {
  func.func @_sem_mlp_kernel(%arg0: i32, %arg1: memref<8x32xbf16, #tpu.memory_space<vmem>>, %arg2: memref<32x256xbf16, #tpu.memory_space<vmem>>, %arg3: memref<1x256xf32, #tpu.memory_space<vmem>>, %arg4: memref<128x128xbf16, #tpu.memory_space<vmem>>, %arg5: memref<1x128xf32, #tpu.memory_space<vmem>>, %arg6: memref<128x128xbf16, #tpu.memory_space<vmem>>, %arg7: memref<8x128xf32, #tpu.memory_space<vmem>>, %arg8: memref<8x128xf32, #tpu.memory_space<vmem>>) attributes {dimension_semantics = [#tpu.dimension_semantics<parallel>], iteration_bounds = array<i64: 1>, scalar_prefetch = 0 : i64, scratch_operands = 0 : i64, tpu.core_type = #tpu.core_type<tc>, window_params = [{transform_indices = @transform_0, window_bounds = array<i64: 8, 32>}, {pipeline_mode = #tpu.pipeline_mode<synchronous>, transform_indices = @transform_1, window_bounds = array<i64: 32, 256>}, {pipeline_mode = #tpu.pipeline_mode<synchronous>, transform_indices = @transform_2, window_bounds = array<i64: 1, 256>}, {pipeline_mode = #tpu.pipeline_mode<synchronous>, transform_indices = @transform_3, window_bounds = array<i64: 128, 128>}, {pipeline_mode = #tpu.pipeline_mode<synchronous>, transform_indices = @transform_4, window_bounds = array<i64: 1, 128>}, {pipeline_mode = #tpu.pipeline_mode<synchronous>, transform_indices = @transform_5, window_bounds = array<i64: 128, 128>}, {transform_indices = @transform_6, window_bounds = array<i64: 8, 128>}, {transform_indices = @transform_7, window_bounds = array<i64: 8, 128>}]} {
    %c0 = arith.constant 0 : index
    %c0_0 = arith.constant 0 : index
    %0 = vector.load %arg1[%c0, %c0_0] : memref<8x32xbf16, #tpu.memory_space<vmem>>, vector<8x32xbf16>
    %c0_1 = arith.constant 0 : index
    %c0_2 = arith.constant 0 : index
    %1 = vector.load %arg2[%c0_1, %c0_2] : memref<32x256xbf16, #tpu.memory_space<vmem>>, vector<32x256xbf16>
    %cst = arith.constant dense<0.000000e+00> : vector<8x256xf32>
    %2 = tpu.matmul %0, %1, %cst {dimension_numbers = #tpu.dot_dimension_numbers<[1], [0], [0], [1], [0, 0, 1, 1], [], []>} : vector<8x32xbf16>, vector<32x256xbf16>, vector<8x256xf32> -> vector<8x256xf32>
    %c0_3 = arith.constant 0 : index
    %c0_4 = arith.constant 0 : index
    %3 = vector.load %arg3[%c0_3, %c0_4] : memref<1x256xf32, #tpu.memory_space<vmem>>, vector<1x256xf32>
    %4 = vector.broadcast %3 : vector<1x256xf32> to vector<8x256xf32>
    %5 = arith.addf %2, %4 : vector<8x256xf32>
    %6 = vector.extract_strided_slice %5 {offsets = [0, 0], sizes = [8, 128], strides = [1, 1]} : vector<8x256xf32> to vector<8x128xf32>
    %7 = vector.extract_strided_slice %5 {offsets = [0, 128], sizes = [8, 128], strides = [1, 1]} : vector<8x256xf32> to vector<8x128xf32>
    %8 = arith.truncf %6 : vector<8x128xf32> to vector<8x128xbf16>
    %c0_5 = arith.constant 0 : index
    %c0_6 = arith.constant 0 : index
    %9 = vector.load %arg4[%c0_5, %c0_6] : memref<128x128xbf16, #tpu.memory_space<vmem>>, vector<128x128xbf16>
    %cst_7 = arith.constant dense<0.000000e+00> : vector<8x128xf32>
    %10 = tpu.matmul %8, %9, %cst_7 {dimension_numbers = #tpu.dot_dimension_numbers<[1], [0], [0], [1], [0, 0, 1, 1], [], []>} : vector<8x128xbf16>, vector<128x128xbf16>, vector<8x128xf32> -> vector<8x128xf32>
    %c0_8 = arith.constant 0 : index
    %c0_9 = arith.constant 0 : index
    %11 = vector.load %arg5[%c0_8, %c0_9] : memref<1x128xf32, #tpu.memory_space<vmem>>, vector<1x128xf32>
    %12 = vector.broadcast %11 : vector<1x128xf32> to vector<8x128xf32>
    %13 = arith.addf %10, %12 : vector<8x128xf32>
    %cst_10 = arith.constant dense<0xFF800000> : vector<8xf32>
    %14 = vector.multi_reduction <maximumf>, %13, %cst_10 [1] : vector<8x128xf32> to vector<8xf32>
    %15 = vector.shape_cast %14 : vector<8xf32> to vector<8x1xf32>
    %16 = vector.broadcast %15 : vector<8x1xf32> to vector<8x128xf32>
    %17 = arith.subf %13, %16 : vector<8x128xf32>
    %18 = math.exp %17 : vector<8x128xf32>
    %cst_11 = arith.constant dense<0.000000e+00> : vector<8xf32>
    %19 = vector.multi_reduction <add>, %18, %cst_11 [1] : vector<8x128xf32> to vector<8xf32>
    %20 = vector.shape_cast %19 : vector<8xf32> to vector<8x1xf32>
    %21 = arith.truncf %18 : vector<8x128xf32> to vector<8x128xbf16>
    %c0_12 = arith.constant 0 : index
    %c0_13 = arith.constant 0 : index
    %22 = vector.load %arg6[%c0_12, %c0_13] : memref<128x128xbf16, #tpu.memory_space<vmem>>, vector<128x128xbf16>
    %cst_14 = arith.constant dense<0.000000e+00> : vector<8x128xf32>
    %23 = tpu.matmul %21, %22, %cst_14 {dimension_numbers = #tpu.dot_dimension_numbers<[1], [0], [0], [1], [0, 0, 1, 1], [], []>} : vector<8x128xbf16>, vector<128x128xbf16>, vector<8x128xf32> -> vector<8x128xf32>
    %24 = tpu.reciprocal %20 {approx = true} : vector<8x1xf32> -> vector<8x1xf32>
    %25 = vector.broadcast %24 : vector<8x1xf32> to vector<8x128xf32>
    %26 = arith.mulf %23, %25 : vector<8x128xf32>
    %c0_15 = arith.constant 0 : index
    %c0_16 = arith.constant 0 : index
    %27 = vector.load %arg7[%c0_15, %c0_16] : memref<8x128xf32, #tpu.memory_space<vmem>>, vector<8x128xf32>
    tpu.vector_store %arg7[%c0_15, %c0_16], %26 {strides = array<i32>} : memref<8x128xf32, #tpu.memory_space<vmem>>, vector<8x128xf32>,
    %c0_17 = arith.constant 0 : index
    %c0_18 = arith.constant 0 : index
    %28 = vector.load %arg8[%c0_17, %c0_18] : memref<8x128xf32, #tpu.memory_space<vmem>>, vector<8x128xf32>
    tpu.vector_store %arg8[%c0_17, %c0_18], %7 {strides = array<i32>} : memref<8x128xf32, #tpu.memory_space<vmem>>, vector<8x128xf32>,
    return
  }
  func.func @transform_0(%arg0: i32) -> (i32, i32) {
    %c0_i32 = arith.constant 0 : i32
    %c0_i32_0 = arith.constant 0 : i32
    return %arg0, %c0_i32 : i32, i32
  }
  func.func @transform_1(%arg0: i32) -> (i32, i32) {
    %c0_i32 = arith.constant 0 : i32
    %c0_i32_0 = arith.constant 0 : i32
    %c0_i32_1 = arith.constant 0 : i32
    return %c0_i32, %c0_i32_0 : i32, i32
  }
  func.func @transform_2(%arg0: i32) -> (i32, i32) {
    %c0_i32 = arith.constant 0 : i32
    %c0_i32_0 = arith.constant 0 : i32
    %c0_i32_1 = arith.constant 0 : i32
    return %c0_i32, %c0_i32_0 : i32, i32
  }
  func.func @transform_3(%arg0: i32) -> (i32, i32) {
    %c0_i32 = arith.constant 0 : i32
    %c0_i32_0 = arith.constant 0 : i32
    %c0_i32_1 = arith.constant 0 : i32
    return %c0_i32, %c0_i32_0 : i32, i32
  }
  func.func @transform_4(%arg0: i32) -> (i32, i32) {
    %c0_i32 = arith.constant 0 : i32
    %c0_i32_0 = arith.constant 0 : i32
    %c0_i32_1 = arith.constant 0 : i32
    return %c0_i32, %c0_i32_0 : i32, i32
  }
  func.func @transform_5(%arg0: i32) -> (i32, i32) {
    %c0_i32 = arith.constant 0 : i32
    %c0_i32_0 = arith.constant 0 : i32
    %c0_i32_1 = arith.constant 0 : i32
    return %c0_i32, %c0_i32_0 : i32, i32
  }
  func.func @transform_6(%arg0: i32) -> (i32, i32) {
    %c0_i32 = arith.constant 0 : i32
    %c0_i32_0 = arith.constant 0 : i32
    return %arg0, %c0_i32 : i32, i32
  }
  func.func @transform_7(%arg0: i32) -> (i32, i32) {
    %c0_i32 = arith.constant 0 : i32
    %c0_i32_0 = arith.constant 0 : i32
    return %arg0, %c0_i32 : i32, i32
  }
}

</mosaic_0001>

<bundles_post_ra>
// kernel: tpu_custom_call.1
= control target key start
LH: loop header
LB: loop body
LE: loop exit
PB: predicated region body
PF: predicated region fallthrough
CT: control target
= control target key end

     0   :  { %13 = vsyncpa [#allocation3], 0  ;;  %s766_s0 = inlined_call_operand.hbm [shape: bf16[8,32], index: 0, kind: input, shape index: {}]   ;;  %s767_s1 = inlined_call_operand.hbm [shape: bf16[32,256], index: 1, kind: input, shape index: {}]   ;;  %s768_s2 = inlined_call_operand.vmem [shape: f32[1,256], index: 2, kind: input, shape index: {}]   ;;  %s769_s3 = inlined_call_operand.hbm [shape: bf16[128,128], index: 3, kind: input, shape index: {}]   ;;  %s770_s4 = inlined_call_operand.vmem [shape: f32[1,128], index: 4, kind: input, shape index: {}]   ;;  %s771_s5 = inlined_call_operand.hbm [shape: bf16[128,128], index: 5, kind: input, shape index: {}]   ;;  %s772_s6 = inlined_call_operand.hbm [shape: f32[8,128], index: 6, kind: output, shape index: {0}]   ;;  %s773_s7 = inlined_call_operand.hbm [shape: f32[8,128], index: 7, kind: output, shape index: {1}]  }
   0x1   :  { %14 = vsyncpa [#allocation6], 0 }
   0x2   :  { %15 = vsyncpa [#allocation9], 0 }
   0x3   :  { %16 = vsyncpa [#allocation4], 0 }
   0x4   :  { %17 = vsyncpa [#allocation12], 0  ;;  %s671_s24 = smov [#allocation5]  }
   0x5   :  { %s33_s25 = sshll.u32 %s671_s24, 4  ;;  %s34_s25 = int_to_ptr.vmem [resolvable:$true] %s33_s25 }
   0x6   :  { %s549_s26 = scalar_lea.vmem %s34_s25, 512  ;;  %p554_p1 = scmp.lt.s32.totalorder %s34_s25, %s34_s25 }
   0x7   :  { %p550_p0 = scmp.ne.s32.totalorder %s34_s25, %s549_s26  ;;  %p555_p2 = scmp.lt.s32.totalorder %s549_s26, %s549_s26 }
   0x9   :  { %p556_p3 = por %p555_p2, %p554_p1 }
   0xb   :  { %p557_p4 = pnand %p556_p3, %p550_p0 }
   0xd   :  { %560 = shalt.err (!%p557_p4)
}
   0xe   :  { %s672_s27 = smov 128   ;;  %s673_s28 = smov 8  }
   0xf   :  { %39 = dma.hbm_to_vmem [thread:$0]  %s767_s1, 512, %s34_s25, [#allocation6], %s672_s27, %s672_s27, %s673_s28  }
  0x10   :  { %s674_s8 = smov [#allocation2]   ;;  %s675_s10 = smov [#allocation7]  }
  0x11   :  { %s24_s9 = sshll.u32 %s674_s8, 4  ;;  %s47_s11 = sshll.u32 %s675_s10, 4  ;;  %s25_s9 = int_to_ptr.vmem [resolvable:$true] %s24_s9  ;;  %s48_s11 = int_to_ptr.vmem [resolvable:$true] %s47_s11 }
  0x12   :  { %s569_s12 = scalar_lea.vmem %s25_s9, 64  ;;  %p574_p6 = scmp.lt.s32.totalorder %s25_s9, %s25_s9 }
  0x13   :  { %p570_p5 = scmp.ne.s32.totalorder %s25_s9, %s569_s12  ;;  %p575_p7 = scmp.lt.s32.totalorder %s569_s12, %s569_s12 }
  0x15   :  { %p576_p8 = por %p575_p7, %p574_p6 }
  0x17   :  { %p577_p9 = pnand %p576_p8, %p570_p5 }
  0x19   :  { %580 = shalt.err (!%p577_p9)
}
  0x1a   :  { %27 = dma.hbm_to_vmem [thread:$0]  %s766_s0, 64, %s25_s9, [#allocation3]  }
  0x1b   :  { %s589_s15 = scalar_lea.vmem %s48_s11, 1024  ;;  %p594_p11 = scmp.lt.s32.totalorder %s48_s11, %s48_s11 }
  0x1c   :  { %p590_p10 = scmp.ne.s32.totalorder %s48_s11, %s589_s15  ;;  %p595_p12 = scmp.lt.s32.totalorder %s589_s15, %s589_s15 }
  0x1e   :  { %p596_p13 = por %p595_p12, %p594_p11 }
  0x20   :  { %p597_p0 = pnand %p596_p13, %p590_p10 }
  0x22   :  { %600 = shalt.err (!%p597_p0)
}
  0x23   :  { %s676_s1 = smov 64   ;;  %s677_s16 = smov 4  }
  0x24   :  { %53 = dma.hbm_to_vmem [thread:$0]  %s769_s3, 1024, %s48_s11, [#allocation6], %s676_s1, %s676_s1, %s677_s16  }
  0x25   :  { %s678_s19 = smov [#allocation8]  }
  0x26   :  { %s61_s20 = sshll.u32 %s678_s19, 4  ;;  %s62_s20 = int_to_ptr.vmem [resolvable:$true] %s61_s20 }
  0x27   :  { %s609_s21 = scalar_lea.vmem %s62_s20, 1024  ;;  %p614_p2 = scmp.lt.s32.totalorder %s62_s20, %s62_s20 }
  0x28   :  { %p610_p1 = scmp.ne.s32.totalorder %s62_s20, %s609_s21  ;;  %p615_p3 = scmp.lt.s32.totalorder %s609_s21, %s609_s21 }
  0x2a   :  { %p616_p4 = por %p615_p3, %p614_p2 }
  0x2c   :  { %p617_p5 = pnand %p616_p4, %p610_p1 }
  0x2e   :  { %620 = shalt.err (!%p617_p5)
}
  0x2f   :  { %67 = dma.hbm_to_vmem [thread:$0]  %s771_s5, 1024, %s62_s20, [#allocation9], %s676_s1, %s676_s1, %s677_s16  }
  0x30   :  { %661 = dma.done.wait [#allocation3], 64  }
  0x31   :  { %662 = vsyncadd [#allocation3], 4294967232 }
  0x32   :  { %663 = dma.done.wait [#allocation6], 1536  }
  0x33   :  { %664 = vsyncadd [#allocation6], 4294965760 }
  0x34   :  { %665 = dma.done.wait [#allocation9], 1024  }
  0x35   :  { %666 = vsyncadd [#allocation9], 4294966272  ;;  %v679_v0 = vmov 0   ;;  %v680_v1 = vmov 0.0   ;;  %v515_v2 = vld [vmem:[#allocation5 + $0x14] ss:$8 sps:$4 sm:$0xff]   ;;  %v88_v15 = vlaneseq }
  0x36   :  { %154 = vmatprep.mubr.bf16.mxu0 %v679_v0  ;;  %462 = vmatprep.subr.bf16.mxu1 %v680_v1  ;;  %v517_v3 = vld [vmem:[#allocation5 + $0x10] ss:$8 sps:$4 sm:$0xff]   ;;  %v518_v4 = vld [vmem:[#allocation5 + $0x4] ss:$8 sps:$4 sm:$0xff]   ;;  %v520_v5 = vld [vmem:[#allocation5] ss:$8 sps:$4 sm:$0xff]  }
  0x37   :  { %134 = vmatprep.subr.bf16.mxu0 %v515_v2  ;;  %v521_v6 = vld [vmem:[#allocation7 + $0x38] sm:$0xff]   ;;  %v522_v7 = vld [vmem:[#allocation7 + $0x30] sm:$0xff]   ;;  %vm118_vm0 = vcmask 261120   ;;  %v523_v9 = vld [vmem:[#allocation7 + $0x28] sm:$0xff]   ;;  %vm681_vm1 = vmmov 0   ;;  %v89_v16 = vshrl.u32 %v88_v15, 7 }
  0x38   :  { %135 = vmatpush1.bf16.msra.mxu0 %v517_v3  ;;  %463 = vmatpush3.bf16.msra.mxu1 %v521_v6  ;;  %v81_v8 = vld [vmem:[#allocation2] sm:$0xf]  ;;  %v524_v10 = vld [vmem:[#allocation7 + $0x20] sm:$0xff]   ;;  %v526_v12 = vld [vmem:[#allocation7 + $0x10] sm:$0xff]  }
  0x39   :  { %136 = vmatprep.subr.bf16.mxu0 %v518_v4  ;;  %464 = vmatprep.subr.bf16.mxu1 %v680_v1  ;;  %v525_v11 = vld [vmem:[#allocation7 + $0x18] sm:$0xff]   ;;  %v527_v13 = vld [vmem:[#allocation7 + $0x8] sm:$0xff]   ;;  %v528_v14 = vld [vmem:[#allocation7] sm:$0xff]   ;;  %v90_v17 = vsub.s32 0, %v89_v16  ;;  %v94_v19 = vsub.s32 1, %v89_v16 }
  0x3a   :  { %478 = vmatprep.mubr.msk.bf16.mxu1 %vm681_vm1, %v680_v1  ;;  %v86_v18 = vld [vmem:[%s768_s2] sm:$0x3]  ;;  %v530_v30 = vld [vmem:[#allocation8 + $0x30] sm:$0xff]   ;;  %v531_v31 = vld [vmem:[#allocation8 + $0x28] sm:$0xff]  }
  0x3b   :  { %v91_v20 = vrot.slane %v86_v18, %v90_v17  ;;  %v95_v21 = vrot.slane %v86_v18, %v94_v19  ;;  %v529_v29 = vld [vmem:[#allocation8 + $0x38] sm:$0xff]   ;;  %v532_v38 = vld [vmem:[#allocation8 + $0x20] sm:$0xff]   ;;  %v534_v40 = vld [vmem:[#allocation8 + $0x10] sm:$0xff]  }
  0x3c   :  { %137 = vmatpush1.bf16.msra.mxu0 %v520_v5  ;;  %465 = vmatpush3.bf16.msra.mxu1 %v522_v7  ;;  %v427_v32 = vld [vmem:[%s770_s4] ss:$0 sm:$0xff]  ;;  %v535_v41 = vld [vmem:[#allocation8 + $0x8] sm:$0xff]   ;;  %v536_v42 = vld [vmem:[#allocation8] sm:$0xff]   ;;  %s682_s4 = smov [#allocation11]  }
  0x3d   :  { %482 = vmatprep.subr.bf16.mxu0 %v680_v1  ;;  %466 = vmatprep.subr.bf16.mxu1 %v680_v1  ;;  %v533_v39 = vld [vmem:[#allocation8 + $0x18] sm:$0xff]   ;;  %s407_s24 = sshll.u32 %s682_s4, 4  ;;  %s408_s24 = int_to_ptr.vmem [resolvable:$true] %s407_s24 }
  0x3e   :  { %s621_s25 = scalar_lea.vmem %s408_s24, 128  ;;  %p626_p7 = scmp.lt.s32.totalorder %s408_s24, %s408_s24 }
  0x3f   :  { %426 = vmatmul.mubr.msk.bf16.vlgmr.msra.gmra.mxu0 %vm118_vm0, %v81_v8  ;;  %p622_p6 = scmp.ne.s32.totalorder %s408_s24, %s621_s25  ;;  %p627_p8 = scmp.lt.s32.totalorder %s621_s25, %s621_s25 }
  0x40   :  { %467 = vmatpush3.bf16.msra.mxu1 %v523_v9  ;;  %498 = vmatprep.mubr.msk.bf16.mxu0 %vm681_vm1, %v680_v1 }
  0x41   :  { %468 = vmatprep.subr.bf16.mxu1 %v680_v1  ;;  %483 = vmatpush3.bf16.msra.mxu0 %v529_v29  ;;  %p628_p9 = por %p627_p8, %p626_p7 }
  0x42   :  { %484 = vmatprep.subr.bf16.mxu0 %v680_v1 }
  0x43   :  { %p629_p10 = pnand %p628_p9, %p622_p6 }
  0x44   :  { %469 = vmatpush3.bf16.msra.mxu1 %v524_v10 }
  0x45   :  { %470 = vmatprep.subr.bf16.mxu1 %v680_v1  ;;  %485 = vmatpush3.bf16.msra.mxu0 %v530_v30 }
  0x46   :  { %486 = vmatprep.subr.bf16.mxu0 %v680_v1 }
  0x48   :  { %471 = vmatpush3.bf16.msra.mxu1 %v525_v11 }
  0x49   :  { %472 = vmatprep.subr.bf16.mxu1 %v680_v1  ;;  %487 = vmatpush3.bf16.msra.mxu0 %v531_v31 }
  0x4a   :  { %488 = vmatprep.subr.bf16.mxu0 %v680_v1 }
  0x4c   :  { %473 = vmatpush3.bf16.msra.mxu1 %v526_v12 }
  0x4d   :  { %474 = vmatprep.subr.bf16.mxu1 %v680_v1  ;;  %489 = vmatpush3.bf16.msra.mxu0 %v532_v38 }
  0x4e   :  { %490 = vmatprep.subr.bf16.mxu0 %v680_v1 }
  0x50   :  { %475 = vmatpush3.bf16.msra.mxu1 %v527_v13 }
  0x51   :  { %476 = vmatprep.subr.bf16.mxu1 %v680_v1  ;;  %491 = vmatpush3.bf16.msra.mxu0 %v533_v39 }
  0x52   :  { %492 = vmatprep.subr.bf16.mxu0 %v680_v1 }
  0x54   :  { %477 = vmatpush3.bf16.msra.mxu1 %v528_v14 }
  0x55   :  { %493 = vmatpush3.bf16.msra.mxu0 %v534_v40 }
  0x56   :  { %494 = vmatprep.subr.bf16.mxu0 %v680_v1 }
  0x59   :  { %495 = vmatpush3.bf16.msra.mxu0 %v535_v41 }
  0x5a   :  { %496 = vmatprep.subr.bf16.mxu0 %v680_v1 }
  0x5d   :  { %497 = vmatpush3.bf16.msra.mxu0 %v536_v42 }
  0xff   :  { %v156_v22 = vpop.f32.mrf.mxu0 }
 0x100   :  { %v157_v23 = vadd.f32 %v156_v22, %v91_v20 }
 0x101   :  { %v158_v24 = vpop.f32.mrf.mxu0 }
 0x102   :  { %v163_v25 = vpack.c.bf16 %v157_v23, %v157_v23  ;;  %v159_v26 = vadd.f32 %v158_v24, %v95_v21 }
 0x103   :  { %v160_v27 = vpop.f32.mrf.mxu0 }
 0x104   :  { %390 = vst [vmem:[#allocation11] sm:$0xff] %v159_v26  ;;  %479 = vmatmul.mubr.bf16.vlgmr.msra.gmra.mxu1 %v163_v25 }
 0x105   :  { %v161_v28 = vpop.f32.mrf.mxu0 }
 0x1c4   :  { %v269_v33 = vpop.f32.mrf.mxu1 }
 0x1c5   :  { %v270_v34 = vadd.f32 %v427_v32, %v269_v33 }
 0x1c6   :  { %v480_v35 = vpop.f32.mrf.mxu1 }
 0x1c7   :  { %275 = vmax.xlane.f32.xlu0 %v270_v34 }
 0x1c8   :  { %v272_v36 = vpop.f32.mrf.mxu1 }
 0x1ca   :  { %v481_v37 = vpop.f32.mrf.mxu1 }
 0x250   :  { %v276_v43 = vpop.xlane.xlu0 %275 }
 0x251   :  { %v277_v44 = vsub.f32 %v270_v34, %v276_v43 }
 0x253   :  { %v278_v45 = vmul.f32 1.442695, %v277_v44 }
 0x255   :  { %537 = vpow2.f32 %v278_v45 }
 0x262   :  { %v538_v46 = vpop.eup %537 }
 0x263   :  { %280 = vadd.xlane.f32.xlu0 %v538_v46  ;;  %v282_v47 = vpack.c.bf16 %v538_v46, %v538_v46 }
 0x265   :  { %499 = vmatmul.mubr.bf16.vlgmr.msra.gmra.mxu0 %v282_v47 }
 0x266   :  { %632 = shalt.err (!%p629_p10)
}
 0x267   :  { %410 = dma.vmem_to_hbm [thread:$0]  %s408_s24, 128, %s773_s7, [#allocation12]  }
 0x268   :  { %s683_s28 = smov [#allocation10]  }
 0x269   :  { %s397_s29 = sshll.u32 %s683_s28, 4  ;;  %s398_s29 = int_to_ptr.vmem [resolvable:$true] %s397_s29 }
 0x26a   :  { %s641_s30 = scalar_lea.vmem %s398_s29, 128  ;;  %p646_p12 = scmp.lt.s32.totalorder %s398_s29, %s398_s29 }
 0x26b   :  { %p642_p11 = scmp.ne.s32.totalorder %s398_s29, %s641_s30  ;;  %p647_p13 = scmp.lt.s32.totalorder %s641_s30, %s641_s30 }
 0x26d   :  { %p648_p0 = por %p647_p13, %p646_p12 }
 0x26f   :  { %p649_p1 = pnand %p648_p0, %p642_p11 }
 0x2ec   :  { %v281_v48 = vpop.xlane.xlu0 %280 }
 0x2ed   :  { %539 = vrcp.f32 %v281_v48 }
 0x2fa   :  { %v540_v49 = vpop.eup %539 }
 0x325   :  { %v381_v50 = vpop.f32.mrf.mxu0 }
 0x326   :  { %v388_v51 = vmul.f32 %v540_v49, %v381_v50 }
 0x327   :  { %v500_v52 = vpop.f32.mrf.mxu0 }
 0x328   :  { %389 = vst [vmem:[#allocation10] sm:$0xff] %v388_v51 }
 0x329   :  { %v384_v53 = vpop.f32.mrf.mxu0 }
 0x32a   :  { %652 = shalt.err (!%p649_p1)
}
 0x32b   :  { %400 = dma.vmem_to_hbm [thread:$0]  %s398_s29, 128, %s772_s6, [#allocation4]   ;;  %v501_v54 = vpop.f32.mrf.mxu0 }
 0x32c   :  { %667 = dma.done.wait [#allocation4], 128  }
 0x32d   :  { %668 = vsyncadd [#allocation4], 4294967168 }
 0x32e   :  { %669 = dma.done.wait [#allocation12], 128  }
 0x32f   :  { %670 = vsyncadd [#allocation12], 4294967168 }
 0x330   :  { %417 = vsyncpa [#allocation3], 1 }
 0x331   :  { %418 = vsyncpa [#allocation6], 1 }
 0x332   :  { %419 = vsyncpa [#allocation9], 1 }
 0x333   :  { %420 = vsyncpa [#allocation4], 1 }
 0x334   :  { %421 = vsyncpa [#allocation12], 1 }

</bundles_post_ra>
